<compile_context>
chip_gen: v6e
topology: v6e:2x2x1
jax: 0.10.0
libtpu: 0.0.40
codegen_flags: <defaults>
</compile_context>

<pallas_src>
import functools

import jax
import jax.numpy as jnp
from jax.experimental import pallas as pl
from jax.experimental.pallas import tpu as pltpu


def _round_up(x, m):
    return ((x + m - 1) // m) * m


def _head_kernel(x_ref, dw_ref, db_ref, ow_ref, ob_ref, out_ref):
    """Fused  tanh(x @ Wd + bd) @ Wo + bo  for one batch tile."""
    x = x_ref[...]                                                   # [TB, H] bf16
    h = jnp.dot(x, dw_ref[...], preferred_element_type=jnp.float32)  # MXU, f32 acc
    h = jnp.tanh(h + db_ref[...])                                    # f32 (EUP)
    y = jnp.dot(h.astype(ow_ref.dtype), ow_ref[...],
                preferred_element_type=jnp.float32)                  # MXU, f32 acc
    out_ref[...] = (y + ob_ref[...]).astype(out_ref.dtype)           # [TB, LP]


def _pick_batch_tile(batch):
    """MXU-friendly batch tile.

    - tiny batches: a single tile rounded up to the 8-sublane granule;
    - otherwise tiles in [128, 512] (1024 for very large batches), chosen so
      the grid has >= 2 steps when the batch allows (lets v7x's two
      TensorCores split the "parallel" batch axis) while keeping the MXU M
      dim well filled (v6e MXU is 2x256x256) and per-step compute much larger
      than the ~0.35 us fixed per-step overhead.
    """
    if batch <= 16:
        return _round_up(max(batch, 1), 8)
    half = _round_up(pl.cdiv(batch, 2), 8)
    cap = 1024 if batch >= 2048 else 512
    return max(128, min(cap, half))


def prepare_head_weights(dense_w, dense_b, out_w, out_b):
    """One-time parameter preprocessing (hoist out of the per-call hot path).

    Weights are stored [in, out].  Returns (dw, db, ow, ob, num_labels) with
    weights in bf16, biases in f32, and the label axis lane-padded to 128.
    """
    H = dense_w.shape[0]
    L = out_w.shape[1]
    LP = _round_up(L, 128)
    dw = dense_w.astype(jnp.bfloat16)                                # [H, H]
    ow = jnp.pad(out_w.astype(jnp.bfloat16), ((0, 0), (0, LP - L)))  # [H, LP]
    db = dense_b.astype(jnp.float32).reshape(1, H)
    ob = jnp.pad(out_b.astype(jnp.float32), (0, LP - L)).reshape(1, LP)
    return dw, db, ow, ob, L


def roberta_classification_head_prepared(features, dw, db, ow, ob, num_labels):
    """features: [B, S, H]; prepared params from prepare_head_weights().

    Returns logits [B, num_labels] in features.dtype.
    """
    B, _, H = features.shape
    LP = ow.shape[1]
    out_dtype = features.dtype
    out_itemsize = jnp.dtype(out_dtype).itemsize

    tb = _pick_batch_tile(B)
    n_tiles = pl.cdiv(B, tb)
    Bp = tb * n_tiles

    # CLS-token slice + bf16 downcast (+ optional batch pad).  With
    # allow_input_fusion on operand 0 this producer fuses into the
    # pallas_call, avoiding a materialized [B, H] HBM intermediate.
    x_cls = features[:, 0, :].astype(jnp.bfloat16)                   # [B, H]
    if Bp != B:
        x_cls = jnp.pad(x_cls, ((0, Bp - B), (0, 0)))                # [Bp, H]

    # Constant-index (VMEM-resident) specs: fetched once, single-buffered.
    def _resident_spec(shape):
        return pl.BlockSpec(shape, lambda i: (0, 0),
                            pipeline_mode=pl.Buffered(1))

    weight_bytes = dw.size * dw.dtype.itemsize + ow.size * ow.dtype.itemsize
    bias_bytes = db.size * db.dtype.itemsize + ob.size * ob.dtype.itemsize
    vmem_est = (weight_bytes + bias_bytes                  # resident, 1 buffer
                + 2 * tb * H * 2                           # x tile, 2 buffers
                + 2 * tb * LP * out_itemsize)              # out tile, 2 buffers

    compiler_kwargs = {}
    if vmem_est > (16 << 20):        # smallest default scoped limit (v5e)
        try:
            vmem_cap = pltpu.get_tpu_info().vmem_capacity_bytes
        except Exception:
            vmem_cap = 64 << 20      # conservative: v7x per-TensorCore VMEM
        limit = max(int(vmem_est * 3 // 2), vmem_est + (4 << 20))
        compiler_kwargs["vmem_limit_bytes"] = int(min(limit, (vmem_cap * 7) // 8))

    cost = pl.CostEstimate(
        flops=2 * Bp * H * H + 2 * Bp * H * LP,
        transcendentals=Bp * H,
        bytes_accessed=(Bp * H * 2 + weight_bytes + bias_bytes
                        + Bp * LP * out_itemsize),
    )

    out_padded = pl.pallas_call(
        _head_kernel,
        out_shape=jax.ShapeDtypeStruct((Bp, LP), out_dtype),
        grid=(n_tiles,),
        in_specs=[
            pl.BlockSpec((tb, H), lambda i: (i, 0)),     # CLS activations
            _resident_spec((H, H)),                      # dense weight
            _resident_spec((1, H)),                      # dense bias
            _resident_spec((H, LP)),                     # out_proj weight (padded)
            _resident_spec((1, LP)),                     # out_proj bias (padded)
        ],
        out_specs=pl.BlockSpec((tb, LP), lambda i: (i, 0)),
        compiler_params=pltpu.CompilerParams(
            dimension_semantics=("parallel",),
            allow_input_fusion=[True, False, False, False, False],
            **compiler_kwargs),
        cost_estimate=cost,
    )(x_cls, dw, db, ow, ob)

    return out_padded[:B, :num_labels]                               # [B, L]


def roberta_classification_head(features, dense_w, dense_b, out_w, out_b):
    """Convenience wrapper (prep + call).  In hot loops, call
    prepare_head_weights() once and reuse roberta_classification_head_prepared()."""
    dw, db, ow, ob, L = prepare_head_weights(dense_w, dense_b, out_w, out_b)
    return roberta_classification_head_prepared(features, dw, db, ow, ob, L)


def _reference(features, dense_w, dense_b, out_w, out_b):
    x = features[:, 0, :]
    x = jnp.tanh(x @ dense_w + dense_b)
    return x @ out_w + out_b


if __name__ == "__main__":
    # Small config consistent with the module: hidden_size=32, num_labels=3.
    B, S, H, L = 2, 8, 32, 3

    key = jax.random.PRNGKey(0)
    k_feat, k_dw, k_db, k_ow, k_ob = jax.random.split(key, 5)

    features = jax.random.normal(k_feat, (B, S, H), dtype=jnp.float32)
    dense_w = jax.random.normal(k_dw, (H, H), dtype=jnp.float32) * 0.05
    dense_b = jax.random.normal(k_db, (H,), dtype=jnp.float32) * 0.05
    out_w = jax.random.normal(k_ow, (H, L), dtype=jnp.float32) * 0.05
    out_b = jax.random.normal(k_ob, (L,), dtype=jnp.float32) * 0.05

    # One-time weight preparation, hoisted out of the per-call path.
    dw, db, ow, ob, num_labels = prepare_head_weights(dense_w, dense_b,
                                                      out_w, out_b)

    fwd = jax.jit(functools.partial(roberta_classification_head_prepared,
                                    num_labels=num_labels))
    logits = jax.block_until_ready(fwd(features, dw, db, ow, ob))

    ref = _reference(features, dense_w, dense_b, out_w, out_b)
    assert logits.shape == (B, num_labels)
    # bf16 MXU operands -> loosen the tolerance vs the f32 reference.
    assert jnp.allclose(logits, ref, atol=2e-2, rtol=2e-2), "mismatch vs reference"

    print("KERNEL_OK")
</pallas_src>

<mosaic_0001>
module attributes {stable_mosaic.version = 11 : i64} {
  func.func @_head_kernel(%arg0: i32, %arg1: memref<8x32xbf16, #tpu.memory_space<vmem>>, %arg2: memref<32x32xbf16, #tpu.memory_space<vmem>>, %arg3: memref<1x32xf32, #tpu.memory_space<vmem>>, %arg4: memref<32x128xbf16, #tpu.memory_space<vmem>>, %arg5: memref<1x128xf32, #tpu.memory_space<vmem>>, %arg6: memref<8x128xf32, #tpu.memory_space<vmem>>) attributes {dimension_semantics = [#tpu.dimension_semantics<parallel>], iteration_bounds = array<i64: 1>, scalar_prefetch = 0 : i64, scratch_operands = 0 : i64, tpu.core_type = #tpu.core_type<tc>, window_params = [{transform_indices = @transform_0, window_bounds = array<i64: 8, 32>}, {pipeline_mode = #tpu.pipeline_mode<synchronous>, transform_indices = @transform_1, window_bounds = array<i64: 32, 32>}, {pipeline_mode = #tpu.pipeline_mode<synchronous>, transform_indices = @transform_2, window_bounds = array<i64: 1, 32>}, {pipeline_mode = #tpu.pipeline_mode<synchronous>, transform_indices = @transform_3, window_bounds = array<i64: 32, 128>}, {pipeline_mode = #tpu.pipeline_mode<synchronous>, transform_indices = @transform_4, window_bounds = array<i64: 1, 128>}, {transform_indices = @transform_5, window_bounds = array<i64: 8, 128>}]} {
    %c0 = arith.constant 0 : index
    %c0_0 = arith.constant 0 : index
    %0 = vector.load %arg1[%c0, %c0_0] : memref<8x32xbf16, #tpu.memory_space<vmem>>, vector<8x32xbf16>
    %c0_1 = arith.constant 0 : index
    %c0_2 = arith.constant 0 : index
    %1 = vector.load %arg2[%c0_1, %c0_2] : memref<32x32xbf16, #tpu.memory_space<vmem>>, vector<32x32xbf16>
    %cst = arith.constant dense<0.000000e+00> : vector<8x32xf32>
    %2 = tpu.matmul %0, %1, %cst {dimension_numbers = #tpu.dot_dimension_numbers<[1], [0], [0], [1], [0, 0, 1, 1], [], []>} : vector<8x32xbf16>, vector<32x32xbf16>, vector<8x32xf32> -> vector<8x32xf32>
    %c0_3 = arith.constant 0 : index
    %c0_4 = arith.constant 0 : index
    %3 = vector.load %arg3[%c0_3, %c0_4] : memref<1x32xf32, #tpu.memory_space<vmem>>, vector<1x32xf32>
    %4 = vector.broadcast %3 : vector<1x32xf32> to vector<8x32xf32>
    %5 = arith.addf %2, %4 : vector<8x32xf32>
    %6 = math.tanh %5 : vector<8x32xf32>
    %7 = arith.truncf %6 : vector<8x32xf32> to vector<8x32xbf16>
    %c0_5 = arith.constant 0 : index
    %c0_6 = arith.constant 0 : index
    %8 = vector.load %arg4[%c0_5, %c0_6] : memref<32x128xbf16, #tpu.memory_space<vmem>>, vector<32x128xbf16>
    %cst_7 = arith.constant dense<0.000000e+00> : vector<8x128xf32>
    %9 = tpu.matmul %7, %8, %cst_7 {dimension_numbers = #tpu.dot_dimension_numbers<[1], [0], [0], [1], [0, 0, 1, 1], [], []>} : vector<8x32xbf16>, vector<32x128xbf16>, vector<8x128xf32> -> vector<8x128xf32>
    %c0_8 = arith.constant 0 : index
    %c0_9 = arith.constant 0 : index
    %10 = vector.load %arg5[%c0_8, %c0_9] : memref<1x128xf32, #tpu.memory_space<vmem>>, vector<1x128xf32>
    %11 = vector.broadcast %10 : vector<1x128xf32> to vector<8x128xf32>
    %12 = arith.addf %9, %11 : vector<8x128xf32>
    %c0_10 = arith.constant 0 : index
    %c0_11 = arith.constant 0 : index
    %13 = vector.load %arg6[%c0_10, %c0_11] : memref<8x128xf32, #tpu.memory_space<vmem>>, vector<8x128xf32>
    tpu.vector_store %arg6[%c0_10, %c0_11], %12 {strides = array<i32>} : memref<8x128xf32, #tpu.memory_space<vmem>>, vector<8x128xf32>,
    return
  }
  func.func @transform_0(%arg0: i32) -> (i32, i32) {
    %c0_i32 = arith.constant 0 : i32
    %c0_i32_0 = arith.constant 0 : i32
    return %arg0, %c0_i32 : i32, i32
  }
  func.func @transform_1(%arg0: i32) -> (i32, i32) {
    %c0_i32 = arith.constant 0 : i32
    %c0_i32_0 = arith.constant 0 : i32
    %c0_i32_1 = arith.constant 0 : i32
    return %c0_i32, %c0_i32_0 : i32, i32
  }
  func.func @transform_2(%arg0: i32) -> (i32, i32) {
    %c0_i32 = arith.constant 0 : i32
    %c0_i32_0 = arith.constant 0 : i32
    %c0_i32_1 = arith.constant 0 : i32
    return %c0_i32, %c0_i32_0 : i32, i32
  }
  func.func @transform_3(%arg0: i32) -> (i32, i32) {
    %c0_i32 = arith.constant 0 : i32
    %c0_i32_0 = arith.constant 0 : i32
    %c0_i32_1 = arith.constant 0 : i32
    return %c0_i32, %c0_i32_0 : i32, i32
  }
  func.func @transform_4(%arg0: i32) -> (i32, i32) {
    %c0_i32 = arith.constant 0 : i32
    %c0_i32_0 = arith.constant 0 : i32
    %c0_i32_1 = arith.constant 0 : i32
    return %c0_i32, %c0_i32_0 : i32, i32
  }
  func.func @transform_5(%arg0: i32) -> (i32, i32) {
    %c0_i32 = arith.constant 0 : i32
    %c0_i32_0 = arith.constant 0 : i32
    return %arg0, %c0_i32 : i32, i32
  }
}

</mosaic_0001>

<bundles_post_ra>
// kernel: roberta_classification_head_prepared.2
= control target key start
LH: loop header
LB: loop body
LE: loop exit
PB: predicated region body
PF: predicated region fallthrough
CT: control target
= control target key end

     0   :  { %s368_s0 = inlined_call_operand.hbm [shape: bf16[32,32], index: 0, kind: input, shape index: {}]   ;;  %s369_s1 = inlined_call_operand.vmem [shape: f32[1,32], index: 1, kind: input, shape index: {}]   ;;  %s370_s2 = inlined_call_operand.hbm [shape: bf16[32,128], index: 2, kind: input, shape index: {}]   ;;  %s371_s3 = inlined_call_operand.vmem [shape: f32[1,128], index: 3, kind: input, shape index: {}]   ;;  %s372_s4 = inlined_call_operand.vmem [shape: bf16[2,32], index: 4, kind: input, shape index: {}]   ;;  %s373_s5 = inlined_call_operand.<no memory space> [shape: bf16[], index: 5, kind: input, shape index: {}]   ;;  %s374_s6 = inlined_call_operand.vmem [shape: f32[8,128], index: 6, kind: output, shape index: {}]  }
   0x1   :  { %v11_v0 = vstv %s373_s5 }
   0x2   :  { %v12_v1 = vunpack.i.l.bf16 %v11_v0 }
   0x3   :  { %16 = vsyncpa [#allocation8], 0 }
   0x4   :  { %17 = vsyncpa [#allocation10], 0  ;;  %s304_s23 = smov [#allocation7]  }
   0x5   :  { %s25_s24 = sshll.u32 %s304_s23, 4  ;;  %s26_s24 = int_to_ptr.vmem [resolvable:$true] %s25_s24 }
   0x6   :  { %s268_s25 = scalar_lea.vmem %s26_s24, 256  ;;  %p273_p1 = scmp.lt.s32.totalorder %s26_s24, %s26_s24 }
   0x7   :  { %p269_p0 = scmp.ne.s32.totalorder %s26_s24, %s268_s25  ;;  %p274_p2 = scmp.lt.s32.totalorder %s268_s25, %s268_s25 }
   0x9   :  { %p275_p3 = por %p274_p2, %p273_p1 }
   0xb   :  { %p276_p4 = pnand %p275_p3, %p269_p0 }
   0xd   :  { %279 = shalt.err (!%p276_p4)
}
   0xe   :  { %s305_s26 = smov 64   ;;  %s306_s27 = smov 4  }
   0xf   :  { %31 = dma.hbm_to_vmem [thread:$0]  %s368_s0, 256, %s26_s24, [#allocation8], %s305_s26, %s305_s26, %s306_s27  }
  0x10   :  { %s307_s5 = smov [#allocation9]  }
  0x11   :  { %s39_s30 = sshll.u32 %s307_s5, 4  ;;  %s40_s30 = int_to_ptr.vmem [resolvable:$true] %s39_s30 }
  0x12   :  { %s288_s7 = scalar_lea.vmem %s40_s30, 256  ;;  %p293_p6 = scmp.lt.s32.totalorder %s40_s30, %s40_s30 }
  0x13   :  { %p289_p5 = scmp.ne.s32.totalorder %s40_s30, %s288_s7  ;;  %p294_p7 = scmp.lt.s32.totalorder %s288_s7, %s288_s7 }
  0x15   :  { %p295_p8 = por %p294_p7, %p293_p6 }
  0x17   :  { %p296_p9 = pnand %p295_p8, %p289_p5 }
  0x19   :  { %299 = shalt.err (!%p296_p9)
}
  0x1a   :  { %45 = dma.hbm_to_vmem [thread:$0]  %s370_s2, 256, %s40_s30, [#allocation10], %s305_s26, %s305_s26, %s306_s27  }
  0x1b   :  { %300 = dma.done.wait [#allocation8], 256  }
  0x1c   :  { %301 = vsyncadd [#allocation8], 4294967040 }
  0x1d   :  { %302 = dma.done.wait [#allocation10], 256  }
  0x1e   :  { %303 = vsyncadd [#allocation10], 4294967040  ;;  %v60_v2 = vlaneseq  ;;  %v308_v3 = vmov 0.0   ;;  %vm309_vm0 = vmmov 0   ;;  %v57_v6 = vld [vmem:[%s372_s4] sm:$0x1] }
  0x1f   :  { %232 = vmatprep.subr.bf16.mxu0 %v308_v3  ;;  %236 = vmatprep.mubr.msk.bf16.mxu0 %vm309_vm0, %v308_v3  ;;  %v58_v7 = vunpack.c.l.bf16 %v57_v6  ;;  %v254_v8 = vld [vmem:[#allocation7 + $0x8] sm:$0xff]   ;;  %v255_v9 = vld [vmem:[#allocation7] sm:$0xff]   ;;  %vm99_vm3 = vcmask 261120   ;;  %v256_v14 = vld [vmem:[#allocation9 + $0x8] sm:$0xff]  }
  0x20   :  { %v61_v4 = vshrl.u32 %v60_v2, 7  ;;  %240 = vmatprep.subr.bf16.mxu1 %v308_v3  ;;  %244 = vmatprep.mubr.msk.bf16.mxu1 %vm309_vm0, %v308_v3  ;;  %v66_v5 = vand.u32 127, %v60_v2  ;;  %v257_v15 = vld [vmem:[#allocation9] sm:$0xff]   ;;  %v218_v16 = vld [vmem:[%s369_s1] ss:$0 sm:$0xff] }
  0x21   :  { %233 = vmatpush3.bf16.msra.mxu0 %v254_v8  ;;  %241 = vmatpush3.bf16.msra.mxu1 %v256_v14  ;;  %v222_v24 = vld [vmem:[%s371_s3] ss:$0 sm:$0xff] }
  0x22   :  { %vm63_vm1 = vcmp.lt.s32.totalorder %v61_v4, 2  ;;  %vm68_vm2 = vcmp.lt.s32.totalorder %v66_v5, 32  ;;  %234 = vmatprep.subr.bf16.mxu0 %v308_v3  ;;  %242 = vmatprep.subr.bf16.mxu1 %v308_v3 }
  0x23   :  { %v64_v10 = vsel %vm63_vm1, %v58_v7, %v12_v1 }
  0x24   :  { %v69_v11 = vsel %vm68_vm2, %v64_v10, %v12_v1 }
  0x25   :  { %v70_v12 = vpack.c.bf16 %v308_v3, %v69_v11  ;;  %235 = vmatpush3.bf16.msra.mxu0 %v255_v9  ;;  %243 = vmatpush3.bf16.msra.mxu1 %v257_v15 }
  0x27   :  { %73 = vst [vmem:[#allocation11] sm:$0xf] %v70_v12 }
  0x2e   :  { %v75_v13 = vld [vmem:[#allocation11] sm:$0xf] }
  0x2f   :  { %237 = vmatmul.mubr.msk.bf16.vlgmr.msra.gmra.mxu0 %vm99_vm3, %v75_v13 }
  0xef   :  { %v137_v17 = vpop.f32.mrf.mxu0 }
  0xf0   :  { %v138_v18 = vadd.f32 %v218_v16, %v137_v17 }
  0xf1   :  { %v238_v19 = vpop.f32.mrf.mxu0 }
  0xf2   :  { %258 = vtanh.f32 %v138_v18 }
  0xf3   :  { %v140_v20 = vpop.f32.mrf.mxu0 }
  0xf5   :  { %v239_v21 = vpop.f32.mrf.mxu0 }
  0xff   :  { %v259_v22 = vpop.eup %258 }
 0x100   :  { %v144_v23 = vpack.c.bf16 %v259_v22, %v259_v22 }
 0x102   :  { %245 = vmatmul.mubr.msk.bf16.vlgmr.msra.gmra.mxu1 %vm99_vm3, %v144_v23 }
 0x1c2   :  { %v205_v25 = vpop.f32.mrf.mxu1 }
 0x1c3   :  { %v206_v26 = vadd.f32 %v222_v24, %v205_v25 }
 0x1c4   :  { %v246_v27 = vpop.f32.mrf.mxu1 }
 0x1c5   :  { %211 = vst [vmem:[%s374_s6] sm:$0xff] %v206_v26 }
 0x1c6   :  { %v208_v28 = vpop.f32.mrf.mxu1 }
 0x1c8   :  { %v247_v29 = vpop.f32.mrf.mxu1 }
 0x1c9   :  { %216 = vsyncpa [#allocation8], 1 }
 0x1ca   :  { %217 = vsyncpa [#allocation10], 1 }

</bundles_post_ra>
